<compile_context>
chip_gen: v7x
topology: tpu7x:2x2x1
jax: 0.10.0
libtpu: 0.0.40
codegen_flags: <defaults>
</compile_context>

<pallas_src>
import functools

import jax
import jax.numpy as jnp
from jax.experimental import pallas as pl
from jax.experimental.pallas import tpu as pltpu

N = 10
INPUT_DIM = 4 * N          # 40 (true model input dim; multiple of 8 -> no pad)
HIDDEN = 128
OUT_DIM = 2
TB_MAX = 2048              # default batch tile (review-recommended 2048-4096)


def _round_up(x, m):
    return ((x + m - 1) // m) * m


def _batch_dim_semantics(B, TB, steps):
    """CORE_PARALLEL on v7x (2 TCs/chip) when the grid splits cleanly across
    both cores; plain "parallel" (near-no-op, safe everywhere) otherwise."""
    try:
        kind = jax.devices()[0].device_kind.lower()
    except Exception:
        kind = ""
    if "v7" in kind and steps >= 2 and steps % 2 == 0 and B % TB == 0:
        return pltpu.CORE_PARALLEL
    return "parallel"


def mlp_kernel(x_ref, w1_ref, w2_ref, w3_ref, b_ref, o_ref, *, compute_dtype):
    # Packed biases: [b1 | b2 | b3 (padded to 128 lanes)] -> static, lane-
    # aligned slices are free.
    b1 = b_ref[:, 0:HIDDEN]
    b2 = b_ref[:, HIDDEN:2 * HIDDEN]
    b3 = b_ref[:, 2 * HIDDEN:2 * HIDDEN + OUT_DIM]

    # In-kernel cast of the x tile (cheap VPU op; x stays f32 in HBM so there
    # is no wrapper cast pass).  No-op when compute_dtype == float32.
    x = x_ref[...].astype(compute_dtype)

    # fc1 + ReLU  (MXU accumulates in f32; bias-add / ReLU stay f32 so the
    # bf16 path is also safe on v5e's f32-only VPU).
    h = jnp.dot(x, w1_ref[...], preferred_element_type=jnp.float32)
    h = jnp.maximum(h + b1, 0.0)

    # fc2 + ReLU  (cast back to the MXU compute dtype only for the push).
    h = jnp.dot(h.astype(compute_dtype), w2_ref[...],
                preferred_element_type=jnp.float32)
    h = jnp.maximum(h + b2, 0.0)

    # fc3 (no activation)
    y = jnp.dot(h.astype(compute_dtype), w3_ref[...],
                preferred_element_type=jnp.float32)
    o_ref[...] = (y + b3).astype(o_ref.dtype)


@functools.partial(jax.jit, static_argnames=("compute_dtype", "tb"))
def simple_nn_forward(x, params, *, compute_dtype=jnp.float32, tb=TB_MAX):
    """Forward pass. params = (w1, b1, w2, b2, w3, b3); weights are stored
    transposed vs. PyTorch, i.e. (in, out), so the kernel computes x @ W + b."""
    w1, b1, w2, b2, w3, b3 = params
    B, D = x.shape
    assert D == w1.shape[0] and w1.shape[1] == HIDDEN

    # Batch tile: multiple of 8 sublanes (x is f32 in HBM), capped at `tb`.
    # No row padding: grid = ceil(B / TB); Pallas masks the ragged tail block.
    TB = _round_up(min(tb, B), 8)
    steps = pl.cdiv(B, TB)

    # One-time tiny (~90 KB) param prep: weights to the MXU compute dtype,
    # biases packed into a single lane-aligned f32 buffer (1, 2*H + 128).
    w1c = w1.astype(compute_dtype)
    w2c = w2.astype(compute_dtype)
    w3c = w3.astype(compute_dtype)
    b_pack = jnp.concatenate(
        [b1, b2, jnp.pad(b3, ((0, 0), (0, 128 - OUT_DIM)))], axis=1
    ).astype(jnp.float32)                                      # (1, 384)

    dim_sem = (_batch_dim_semantics(B, TB, steps),)
    kernel = functools.partial(mlp_kernel, compute_dtype=compute_dtype)

    return pl.pallas_call(
        kernel,
        out_shape=jax.ShapeDtypeStruct((B, OUT_DIM), jnp.float32),
        grid=(steps,),
        in_specs=[
            # x: tiled over batch rows -> double-buffered behind the MXU work.
            pl.BlockSpec((TB, D), lambda i: (i, 0)),
            # Weights / packed biases: constant index_map -> resident in VMEM.
            pl.BlockSpec((D, HIDDEN), lambda i: (0, 0)),
            pl.BlockSpec((HIDDEN, HIDDEN), lambda i: (0, 0)),
            pl.BlockSpec((HIDDEN, OUT_DIM), lambda i: (0, 0)),
            pl.BlockSpec((1, 2 * HIDDEN + 128), lambda i: (0, 0)),
        ],
        out_specs=pl.BlockSpec((TB, OUT_DIM), lambda i: (i, 0)),
        compiler_params=pltpu.CompilerParams(
            dimension_semantics=dim_sem,
            vmem_limit_bytes=32 * 1024 * 1024),
    )(x, w1c, w2c, w3c, b_pack)


def init_params(key):
    """Deterministic init mimicking nn.Linear default (U[-1/sqrt(fan_in), +]).
    Weights are stored as (in, out) = PyTorch weight.T; no padding needed."""
    ks = jax.random.split(key, 6)

    def linear(kw, kb, fan_in, fan_out):
        bound = 1.0 / jnp.sqrt(fan_in)
        w = jax.random.uniform(kw, (fan_in, fan_out), jnp.float32, -bound, bound)
        b = jax.random.uniform(kb, (1, fan_out), jnp.float32, -bound, bound)
        return w, b

    w1, b1 = linear(ks[0], ks[1], INPUT_DIM, HIDDEN)
    w2, b2 = linear(ks[2], ks[3], HIDDEN, HIDDEN)
    w3, b3 = linear(ks[4], ks[5], HIDDEN, OUT_DIM)
    return (w1, b1, w2, b2, w3, b3)


def reference_forward(x, params):
    w1, b1, w2, b2, w3, b3 = params
    h = jnp.maximum(x @ w1 + b1, 0.0)
    h = jnp.maximum(h @ w2 + b2, 0.0)
    return h @ w3 + b3


if __name__ == "__main__":
    key = jax.random.PRNGKey(0)
    kx, kp = jax.random.split(key)
    params = init_params(kp)

    # Small batch, single grid step.
    B = 8
    x = jax.random.normal(kx, (B, INPUT_DIM), jnp.float32)
    ref = reference_forward(x, params)

    out_f32 = jax.block_until_ready(simple_nn_forward(x, params))
    assert out_f32.shape == (B, OUT_DIM)
    assert jnp.allclose(out_f32, ref, atol=1e-5, rtol=1e-5)

    # bf16 MXU path (f32 accumulation / bias / ReLU) — valid on all generations.
    out_bf16 = jax.block_until_ready(
        simple_nn_forward(x, params, compute_dtype=jnp.bfloat16))
    assert out_bf16.shape == (B, OUT_DIM)
    assert jnp.allclose(out_bf16, ref, atol=2e-1, rtol=1e-1)

    # Ragged batch (B % TB != 0): exercises the un-padded ragged last block.
    B2 = 200
    x2 = jax.random.normal(kx, (B2, INPUT_DIM), jnp.float32)
    ref2 = reference_forward(x2, params)
    out2 = jax.block_until_ready(simple_nn_forward(x2, params, tb=64))
    assert out2.shape == (B2, OUT_DIM)
    assert jnp.allclose(out2, ref2, atol=1e-5, rtol=1e-5)

    print("KERNEL_OK")
</pallas_src>

<mosaic_0001>
module attributes {stable_mosaic.version = 11 : i64} {
  func.func @mlp_kernel(%arg0: i32, %arg1: memref<8x40xf32, #tpu.memory_space<vmem>>, %arg2: memref<40x128xf32, #tpu.memory_space<vmem>>, %arg3: memref<128x128xf32, #tpu.memory_space<vmem>>, %arg4: memref<128x2xf32, #tpu.memory_space<vmem>>, %arg5: memref<1x384xf32, #tpu.memory_space<vmem>>, %arg6: memref<8x2xf32, #tpu.memory_space<vmem>>) attributes {dimension_semantics = [#tpu.dimension_semantics<parallel>], iteration_bounds = array<i64: 1>, scalar_prefetch = 0 : i64, scratch_operands = 0 : i64, tpu.core_type = #tpu.core_type<tc>, window_params = [{transform_indices = @transform_0, window_bounds = array<i64: 8, 40>}, {pipeline_mode = #tpu.pipeline_mode<synchronous>, transform_indices = @transform_1, window_bounds = array<i64: 40, 128>}, {pipeline_mode = #tpu.pipeline_mode<synchronous>, transform_indices = @transform_2, window_bounds = array<i64: 128, 128>}, {pipeline_mode = #tpu.pipeline_mode<synchronous>, transform_indices = @transform_3, window_bounds = array<i64: 128, 2>}, {pipeline_mode = #tpu.pipeline_mode<synchronous>, transform_indices = @transform_4, window_bounds = array<i64: 1, 384>}, {transform_indices = @transform_5, window_bounds = array<i64: 8, 2>}]} {
    %c0 = arith.constant 0 : index
    %c0_0 = arith.constant 0 : index
    %0 = vector.load %arg5[%c0, %c0_0] : memref<1x384xf32, #tpu.memory_space<vmem>>, vector<1x128xf32>
    %c0_1 = arith.constant 0 : index
    %c128 = arith.constant 128 : index
    %1 = vector.load %arg5[%c0_1, %c128] : memref<1x384xf32, #tpu.memory_space<vmem>>, vector<1x128xf32>
    %c0_2 = arith.constant 0 : index
    %c256 = arith.constant 256 : index
    %2 = vector.load %arg5[%c0_2, %c256] : memref<1x384xf32, #tpu.memory_space<vmem>>, vector<1x2xf32>
    %c0_3 = arith.constant 0 : index
    %c0_4 = arith.constant 0 : index
    %3 = vector.load %arg1[%c0_3, %c0_4] : memref<8x40xf32, #tpu.memory_space<vmem>>, vector<8x40xf32>
    %c0_5 = arith.constant 0 : index
    %c0_6 = arith.constant 0 : index
    %4 = vector.load %arg2[%c0_5, %c0_6] : memref<40x128xf32, #tpu.memory_space<vmem>>, vector<40x128xf32>
    %cst = arith.constant dense<0.000000e+00> : vector<8x128xf32>
    %5 = tpu.matmul %3, %4, %cst {dimension_numbers = #tpu.dot_dimension_numbers<[1], [0], [0], [1], [0, 0, 1, 1], [], []>} : vector<8x40xf32>, vector<40x128xf32>, vector<8x128xf32> -> vector<8x128xf32>
    %6 = vector.broadcast %0 : vector<1x128xf32> to vector<8x128xf32>
    %7 = arith.addf %5, %6 : vector<8x128xf32>
    %cst_7 = arith.constant 0.000000e+00 : f32
    %8 = vector.broadcast %cst_7 : f32 to vector<8x128xf32>
    %9 = arith.maximumf %7, %8 : vector<8x128xf32>
    %c0_8 = arith.constant 0 : index
    %c0_9 = arith.constant 0 : index
    %10 = vector.load %arg3[%c0_8, %c0_9] : memref<128x128xf32, #tpu.memory_space<vmem>>, vector<128x128xf32>
    %cst_10 = arith.constant dense<0.000000e+00> : vector<8x128xf32>
    %11 = tpu.matmul %9, %10, %cst_10 {dimension_numbers = #tpu.dot_dimension_numbers<[1], [0], [0], [1], [0, 0, 1, 1], [], []>} : vector<8x128xf32>, vector<128x128xf32>, vector<8x128xf32> -> vector<8x128xf32>
    %12 = vector.broadcast %1 : vector<1x128xf32> to vector<8x128xf32>
    %13 = arith.addf %11, %12 : vector<8x128xf32>
    %cst_11 = arith.constant 0.000000e+00 : f32
    %14 = vector.broadcast %cst_11 : f32 to vector<8x128xf32>
    %15 = arith.maximumf %13, %14 : vector<8x128xf32>
    %c0_12 = arith.constant 0 : index
    %c0_13 = arith.constant 0 : index
    %16 = vector.load %arg4[%c0_12, %c0_13] : memref<128x2xf32, #tpu.memory_space<vmem>>, vector<128x2xf32>
    %cst_14 = arith.constant dense<0.000000e+00> : vector<8x2xf32>
    %17 = tpu.matmul %15, %16, %cst_14 {dimension_numbers = #tpu.dot_dimension_numbers<[1], [0], [0], [1], [0, 0, 1, 1], [], []>} : vector<8x128xf32>, vector<128x2xf32>, vector<8x2xf32> -> vector<8x2xf32>
    %18 = vector.broadcast %2 : vector<1x2xf32> to vector<8x2xf32>
    %19 = arith.addf %17, %18 : vector<8x2xf32>
    %c0_15 = arith.constant 0 : index
    %c0_16 = arith.constant 0 : index
    %20 = vector.load %arg6[%c0_15, %c0_16] : memref<8x2xf32, #tpu.memory_space<vmem>>, vector<8x2xf32>
    tpu.vector_store %arg6[%c0_15, %c0_16], %19 {strides = array<i32>} : memref<8x2xf32, #tpu.memory_space<vmem>>, vector<8x2xf32>,
    return
  }
  func.func @transform_0(%arg0: i32) -> (i32, i32) {
    %c0_i32 = arith.constant 0 : i32
    %c0_i32_0 = arith.constant 0 : i32
    return %arg0, %c0_i32 : i32, i32
  }
  func.func @transform_1(%arg0: i32) -> (i32, i32) {
    %c0_i32 = arith.constant 0 : i32
    %c0_i32_0 = arith.constant 0 : i32
    %c0_i32_1 = arith.constant 0 : i32
    return %c0_i32, %c0_i32_0 : i32, i32
  }
  func.func @transform_2(%arg0: i32) -> (i32, i32) {
    %c0_i32 = arith.constant 0 : i32
    %c0_i32_0 = arith.constant 0 : i32
    %c0_i32_1 = arith.constant 0 : i32
    return %c0_i32, %c0_i32_0 : i32, i32
  }
  func.func @transform_3(%arg0: i32) -> (i32, i32) {
    %c0_i32 = arith.constant 0 : i32
    %c0_i32_0 = arith.constant 0 : i32
    %c0_i32_1 = arith.constant 0 : i32
    return %c0_i32, %c0_i32_0 : i32, i32
  }
  func.func @transform_4(%arg0: i32) -> (i32, i32) {
    %c0_i32 = arith.constant 0 : i32
    %c0_i32_0 = arith.constant 0 : i32
    %c0_i32_1 = arith.constant 0 : i32
    return %c0_i32, %c0_i32_0 : i32, i32
  }
  func.func @transform_5(%arg0: i32) -> (i32, i32) {
    %c0_i32 = arith.constant 0 : i32
    %c0_i32_0 = arith.constant 0 : i32
    return %arg0, %c0_i32 : i32, i32
  }
}

</mosaic_0001>

<bundles_post_ra>
// kernel: simple_nn_forward.1
= control target key start
LH: loop header
LB: loop body
LE: loop exit
PB: predicated region body
PF: predicated region fallthrough
CT: control target
= control target key end

     0   :  { %10 = vsyncpa [#allocation3], 0  ;;  %s527_s18 = smov [#allocation2]   ;;  %s707_s0 = inlined_call_operand.vmem [shape: f32[8,40], index: 0, kind: input, shape index: {}]   ;;  %s708_s1 = inlined_call_operand.hbm [shape: f32[40,128], index: 1, kind: input, shape index: {}]   ;;  %s709_s2 = inlined_call_operand.vmem [shape: f32[128,128], index: 2, kind: input, shape index: {}]   ;;  %s710_s3 = inlined_call_operand.vmem [shape: f32[128,2], index: 3, kind: input, shape index: {}]   ;;  %s711_s4 = inlined_call_operand.vmem [shape: f32[1,384], index: 4, kind: input, shape index: {}]   ;;  %s712_s5 = inlined_call_operand.vmem [shape: f32[8,2], index: 5, kind: output, shape index: {}]  }
   0x1   :  { %s18_s19 = sshll.u32 %s527_s18, 4  ;;  %s503_s22 = scalar_lea.hbm %s708_s1, 640  ;;  %s19_s19 = int_to_ptr.vmem [resolvable:$true] %s18_s19 }
   0x2   :  { %p504_p0 = scmp.ne.s32.totalorder %s708_s1, %s503_s22  ;;  %p507_p1 = scmp.lt.u32.totalorder %s503_s22, %s708_s1 }
   0x4   :  { %p509_p2 = pnand %p507_p1, %p504_p0 }
   0x6   :  { %512 = shalt.err (!%p509_p2)
}
   0x7   :  { %s513_s27 = scalar_lea.vmem %s19_s19, 640  ;;  %p518_p4 = scmp.lt.s32.totalorder %s19_s19, %s19_s19 }
   0x8   :  { %p514_p3 = scmp.ne.s32.totalorder %s19_s19, %s513_s27  ;;  %p519_p5 = scmp.lt.s32.totalorder %s513_s27, %s513_s27 }
   0xa   :  { %p520_p6 = por %p519_p5, %p518_p4 }
   0xc   :  { %p521_p7 = pnand %p520_p6, %p514_p3 }
   0xe   :  { %524 = shalt.err (!%p521_p7)
}
   0xf   :  { %s528_s28 = smov 128   ;;  %s529_s29 = smov 8  }
  0x10   :  { %24 = dma.hbm_to_vmem [thread:$0]  %s708_s1, 640, %s19_s19, [#allocation3], %s528_s28, %s528_s28, %s529_s29  }
  0x11   :  { %525 = dma.done.wait [#allocation3], 640  }
  0x12   :  { %526 = vsyncadd [#allocation3], 4294966656  ;;  %v530_v0 = vmov 0.0|0.0   ;;  %vm531_vm0 = vmmov 0   ;;  %v532_v1 = vmov 0.0   ;;  %v38_v2 = vld [vmem:[#allocation2] sm:$0xff] }
  0x13   :  { %443 = vmatprep.subr.bf16.mxu0 %v530_v0  ;;  %370 = vmatprep.mubr.msk.f32.mxu0 %vm531_vm0, %v532_v1  ;;  %v39_v3 = vld [vmem:[#allocation2 + $0x8] sm:$0xff]  ;;  %v40_v4 = vld [vmem:[#allocation2 + $0x10] sm:$0xff]  ;;  %v41_v6 = vld [vmem:[#allocation2 + $0x18] sm:$0xff]  ;;  %vm49_vm1 = vcmask 326656   ;;  %vm309_vm2 = vcmask 15360  }
  0x14   :  { %449 = vmatprep.subr.bf16.mxu1 %v530_v0  ;;  %405 = vmatprep.mubr.msk.f32.mxu1 %vm531_vm0, %v532_v1  ;;  %v444_v5 = vpack.c.bf16 %v39_v3, %v38_v2  ;;  %v124_v7 = vld [vmem:[%s709_s2] sm:$0xff]  ;;  %v125_v8 = vld [vmem:[%s709_s2 + $0x8] sm:$0xff]  ;;  %v126_v9 = vld [vmem:[%s709_s2 + $0x10] sm:$0xff]  ;;  %v447_v10 = vpack.c.bf16 %v41_v6, %v40_v4 }
  0x15   :  { %v450_v11 = vpack.c.bf16 %v125_v8, %v124_v7  ;;  %v127_v12 = vld [vmem:[%s709_s2 + $0x18] sm:$0xff]  ;;  %v128_v14 = vld [vmem:[%s709_s2 + $0x20] sm:$0xff]  ;;  %v129_v15 = vld [vmem:[%s709_s2 + $0x28] sm:$0xff] }
  0x16   :  { %445 = vmatpush3.bf16.msra.mxu0 %v444_v5  ;;  %v453_v13 = vpack.c.bf16 %v127_v12, %v126_v9  ;;  %v42_v16 = vld [vmem:[#allocation2 + $0x20] sm:$0xff]  ;;  %v456_v18 = vpack.c.bf16 %v129_v15, %v128_v14  ;;  %v130_v19 = vld [vmem:[%s709_s2 + $0x30] sm:$0xff]  ;;  %v131_v20 = vld [vmem:[%s709_s2 + $0x38] sm:$0xff] }
  0x17   :  { %446 = vmatprep.subr.bf16.mxu0 %v530_v0  ;;  %451 = vmatpush3.bf16.msra.mxu1 %v450_v11  ;;  %v37_v17 = vld [vmem:[%s707_s0] sm:$0xff]  ;;  %v459_v21 = vpack.c.bf16 %v131_v20, %v130_v19  ;;  %v133_v23 = vld [vmem:[%s709_s2 + $0x48] sm:$0xff]  ;;  %v134_v25 = vld [vmem:[%s709_s2 + $0x50] sm:$0xff] }
  0x18   :  { %452 = vmatprep.subr.bf16.mxu1 %v530_v0  ;;  %v132_v22 = vld [vmem:[%s709_s2 + $0x40] sm:$0xff]  ;;  %v135_v26 = vld [vmem:[%s709_s2 + $0x58] sm:$0xff]  ;;  %v137_v29 = vld [vmem:[%s709_s2 + $0x68] sm:$0xff] }
  0x19   :  { %v462_v24 = vpack.c.bf16 %v133_v23, %v132_v22  ;;  %v465_v27 = vpack.c.bf16 %v135_v26, %v134_v25  ;;  %v136_v28 = vld [vmem:[%s709_s2 + $0x60] sm:$0xff]  ;;  %v138_v31 = vld [vmem:[%s709_s2 + $0x70] sm:$0xff]  ;;  %v139_v32 = vld [vmem:[%s709_s2 + $0x78] sm:$0xff] }
  0x1a   :  { %448 = vmatpush3.bf16.msra.mxu0 %v447_v10  ;;  %v468_v30 = vpack.c.bf16 %v137_v29, %v136_v28  ;;  %v471_v33 = vpack.c.bf16 %v139_v32, %v138_v31  ;;  %v217_v34 = vld [vmem:[%s710_s3] sm:$0xff]  ;;  %v218_v35 = vld [vmem:[%s710_s3 + $0x8] sm:$0xff]  ;;  %v219_v36 = vld [vmem:[%s710_s3 + $0x10] sm:$0xff] }
  0x1b   :  { %368 = vmatprep.subr.mxu0 %v532_v1  ;;  %454 = vmatpush3.bf16.msra.mxu1 %v453_v13  ;;  %v474_v37 = vpack.c.bf16 %v218_v35, %v217_v34  ;;  %v220_v38 = vld [vmem:[%s710_s3 + $0x18] sm:$0xff]  ;;  %v221_v40 = vld [vmem:[%s710_s3 + $0x20] sm:$0xff]  ;;  %v222_v41 = vld [vmem:[%s710_s3 + $0x28] sm:$0xff] }
  0x1c   :  { %455 = vmatprep.subr.bf16.mxu1 %v530_v0  ;;  %v477_v39 = vpack.c.bf16 %v220_v38, %v219_v36  ;;  %v480_v42 = vpack.c.bf16 %v222_v41, %v221_v40  ;;  %v223_v43 = vld [vmem:[%s710_s3 + $0x30] sm:$0xff]  ;;  %v224_v44 = vld [vmem:[%s710_s3 + $0x38] sm:$0xff]  ;;  %v225_v46 = vld [vmem:[%s710_s3 + $0x40] sm:$0xff] }
  0x1d   :  { %v483_v45 = vpack.c.bf16 %v224_v44, %v223_v43  ;;  %v226_v47 = vld [vmem:[%s710_s3 + $0x48] sm:$0xff]  ;;  %v227_v49 = vld [vmem:[%s710_s3 + $0x50] sm:$0xff]  ;;  %v228_v50 = vld [vmem:[%s710_s3 + $0x58] sm:$0xff] }
  0x1e   :  { %369 = vmatpush3.msra.mxu0 %v42_v16  ;;  %v486_v48 = vpack.c.bf16 %v226_v47, %v225_v46  ;;  %v489_v51 = vpack.c.bf16 %v228_v50, %v227_v49  ;;  %v229_v52 = vld [vmem:[%s710_s3 + $0x60] sm:$0xff]  ;;  %v230_v53 = vld [vmem:[%s710_s3 + $0x68] sm:$0xff]  ;;  %v231_v60 = vld [vmem:[%s710_s3 + $0x70] sm:$0xff] }
  0x1f   :  { %371 = vmatmul.mubr.msk.f32.vlgmr.msra.gmra.mrb[0].mxu0 %vm49_vm1, %v37_v17  ;;  %473 = vmatprep.subr.bf16.mxu0 %v530_v0  ;;  %v492_v54 = vpack.c.bf16 %v230_v53, %v229_v52  ;;  %v316_v55 = vld [vmem:[%s711_s4] ss:$0 sm:$0xff]  ;;  %v232_v61 = vld [vmem:[%s710_s3 + $0x78] sm:$0xff]  ;;  %v318_v63 = vld [vmem:[%s711_s4 + $0x1] ss:$0 sm:$0xff] }
  0x20   :  { %457 = vmatpush3.bf16.msra.mxu1 %v456_v18  ;;  %440 = vmatprep.mubr.msk.f32.mxu0 %vm531_vm0, %v532_v1  ;;  %v495_v62 = vpack.c.bf16 %v232_v61, %v231_v60  ;;  %v319_v4 = vld [vmem:[%s711_s4 + $0x2] ss:$0 sm:$0xff] }
  0x21   :  { %458 = vmatprep.subr.bf16.mxu1 %v530_v0  ;;  %475 = vmatpush3.bf16.msra.mxu0 %v474_v37 }
  0x22   :  { %476 = vmatprep.subr.bf16.mxu0 %v530_v0 }
  0x24   :  { %460 = vmatpush3.bf16.msra.mxu1 %v459_v21 }
  0x25   :  { %461 = vmatprep.subr.bf16.mxu1 %v530_v0  ;;  %478 = vmatpush3.bf16.msra.mxu0 %v477_v39 }
  0x26   :  { %479 = vmatprep.subr.bf16.mxu0 %v530_v0 }
  0x28   :  { %463 = vmatpush3.bf16.msra.mxu1 %v462_v24 }
  0x29   :  { %464 = vmatprep.subr.bf16.mxu1 %v530_v0  ;;  %481 = vmatpush3.bf16.msra.mxu0 %v480_v42 }
  0x2a   :  { %482 = vmatprep.subr.bf16.mxu0 %v530_v0 }
  0x2c   :  { %466 = vmatpush3.bf16.msra.mxu1 %v465_v27 }
  0x2d   :  { %467 = vmatprep.subr.bf16.mxu1 %v530_v0  ;;  %484 = vmatpush3.bf16.msra.mxu0 %v483_v45 }
  0x2e   :  { %485 = vmatprep.subr.bf16.mxu0 %v530_v0 }
  0x30   :  { %469 = vmatpush3.bf16.msra.mxu1 %v468_v30 }
  0x31   :  { %470 = vmatprep.subr.bf16.mxu1 %v530_v0  ;;  %487 = vmatpush3.bf16.msra.mxu0 %v486_v48 }
  0x32   :  { %488 = vmatprep.subr.bf16.mxu0 %v530_v0 }
  0x34   :  { %472 = vmatpush3.bf16.msra.mxu1 %v471_v33 }
  0x35   :  { %490 = vmatpush3.bf16.msra.mxu0 %v489_v51 }
  0x36   :  { %491 = vmatprep.subr.bf16.mxu0 %v530_v0 }
  0x39   :  { %493 = vmatpush3.bf16.msra.mxu0 %v492_v54 }
  0x3a   :  { %494 = vmatprep.subr.bf16.mxu0 %v530_v0 }
  0x3d   :  { %496 = vmatpush3.bf16.msra.mxu0 %v495_v62 }
  0xf2   :  { %v119_v56 = vpop.f32.mrb[0].mxu0 }
  0xf3   :  { %v120_v57 = vadd.f32 %v316_v55, %v119_v56  ;;  %v372_v58 = vpop.f32.mrb[1].mxu0 }
  0xf5   :  { %v123_v59 = vmax.f32 %v120_v57, 0.0 }
  0xf7   :  { %406 = vmatmul.mubr.f32.vlgmr.msra.gmra.mrb[0].mxu1 %v123_v59 }
 0x1ca   :  { %v212_v0 = vpop.f32.mrb[0].mxu1 }
 0x1cb   :  { %v213_v1 = vadd.f32 %v318_v63, %v212_v0  ;;  %v407_v2 = vpop.f32.mrb[1].mxu1 }
 0x1cd   :  { %v216_v3 = vmax.f32 %v213_v1, 0.0 }
 0x1cf   :  { %441 = vmatmul.mubr.f32.vlgmr.msra.gmra.mrb[2].mxu0 %v216_v3 }
 0x2a2   :  { %v305_v5 = vpop.f32.mrb[2].mxu0 }
 0x2a3   :  { %v306_v6 = vadd.f32 %v319_v4, %v305_v5  ;;  %v442_v7 = vpop.f32.mrb[3].mxu0 }
 0x2a5   :  { %310 = vst.msk [vmem:[%s712_s5] sm:$0xff] %vm309_vm2, %v306_v6 }
 0x2a6   :  { %315 = vsyncpa [#allocation3], 1 }

</bundles_post_ra>
